<compile_context>
chip_gen: v7x
topology: tpu7x:2x2x1
jax: 0.10.0
libtpu: 0.0.40
codegen_flags: <defaults>
</compile_context>

<pallas_src>
import jax
import jax.numpy as jnp
from jax.experimental import pallas as pl
from jax.experimental.pallas import tpu as pltpu

NEG_SLOPE = 0.01  # nn.LeakyReLU() default
BN_EPS = 1e-5     # nn.BatchNorm2d default


def _make_root_kernel(n_children, skip):
    """Builds a kernel for a fixed number of children and skip flag."""

    def kernel(*refs):
        x_refs = refs[:n_children]                      # (1, Ci, tile_hw) each
        w_refs = refs[n_children:2 * n_children]        # (Cout, Ci) each
        scale_ref = refs[2 * n_children]                # (Cout, 1)
        bias_ref = refs[2 * n_children + 1]             # (Cout, 1)
        o_ref = refs[2 * n_children + 2]                # (1, Cout, tile_hw)

        # 1x1 conv over the (virtually) concatenated channel axis:
        # sum of per-child (Cout, Ci) @ (Ci, tile_hw) MXU matmuls, f32 accumulation.
        acc = jnp.dot(w_refs[0][...], x_refs[0][0],
                      preferred_element_type=jnp.float32)
        for i in range(1, n_children):
            acc = acc + jnp.dot(w_refs[i][...], x_refs[i][0],
                                preferred_element_type=jnp.float32)

        # Folded BatchNorm (eval mode): per-Cout scale/bias broadcast over pixels.
        y = acc * scale_ref[...] + bias_ref[...]

        if skip:
            # children[0] is already an input block -> reuse it for the residual.
            y = y + x_refs[0][0].astype(jnp.float32)

        # LeakyReLU as a single mul+max on the VPU.
        y = jnp.maximum(y, NEG_SLOPE * y)
        o_ref[0] = y.astype(o_ref.dtype)

    return kernel


def _pick_tile_hw(hw, c_in_total, c_out, in_bytes, out_bytes,
                  tile_hw_max=2048, vmem_budget=24 * 1024 * 1024):
    """Largest lane tile (multiple of 128) whose double-buffered blocks fit VMEM."""
    if hw < 128:
        # last block dim may equal the full array dim when it is < 128
        return hw
    tile = min(tile_hw_max, (hw // 128) * 128)

    def pipeline_bytes(t):
        # double-buffered per-child inputs + double-buffered output per grid step
        return 2 * t * (c_in_total * in_bytes + c_out * out_bytes)

    while tile > 128 and pipeline_bytes(tile) > vmem_budget:
        tile = max(128, (tile // 2) // 128 * 128)
    return tile


def root_forward(children, weight, gamma, beta, running_mean, running_var,
                 *, skip, tile_hw_max=2048):
    """children: list of NCHW arrays. weight: (Cout, Cin, 1, 1) PyTorch layout."""
    n_children = len(children)
    n, _, h, w = children[0].shape
    c_out, c_in = weight.shape[0], weight.shape[1]
    assert weight.shape[2] == 1 and weight.shape[3] == 1, \
        "Root is instantiated with kernel_size=1 (1x1 conv)"
    # TODO(synk): kernel_size > 1 (padding = k//2) path not implemented.

    c_children = [c.shape[1] for c in children]
    assert sum(c_children) == c_in, "children channels must sum to Cin"
    if skip and c_children[0] != c_out:
        raise ValueError("skip=True requires children[0] to have out_channels channels")

    hw = h * w
    x_dtype = children[0].dtype
    out_dtype = x_dtype

    # (N, Ci, H, W) -> (N, Ci, H*W): contiguous reshape, no transpose, no concat.
    xs = [c.reshape(n, c.shape[1], hw) for c in children]

    # Split the (Cout, Cin, 1, 1) weight along Cin per child; compute in x's dtype.
    w_full = weight.reshape(c_out, c_in)
    w_parts, off = [], 0
    for ci in c_children:
        w_parts.append(w_full[:, off:off + ci].astype(x_dtype))
        off += ci

    # Fold BN (eval mode) into per-channel scale / bias, shaped (Cout, 1).
    inv_std = jax.lax.rsqrt(running_var.astype(jnp.float32) + BN_EPS)
    g32 = gamma.astype(jnp.float32)
    scale = (g32 * inv_std).reshape(c_out, 1)
    bias = (beta.astype(jnp.float32)
            - running_mean.astype(jnp.float32) * g32 * inv_std).reshape(c_out, 1)

    in_bytes = jnp.dtype(x_dtype).itemsize
    out_bytes = jnp.dtype(out_dtype).itemsize
    tile_hw = _pick_tile_hw(hw, c_in, c_out, in_bytes, out_bytes, tile_hw_max)
    grid = (n, pl.cdiv(hw, tile_hw))

    x_specs = [pl.BlockSpec((1, ci, tile_hw), lambda b, j: (b, 0, j))
               for ci in c_children]
    w_specs = [pl.BlockSpec((c_out, ci), lambda b, j: (0, 0))
               for ci in c_children]
    sb_spec = pl.BlockSpec((c_out, 1), lambda b, j: (0, 0))
    out_spec = pl.BlockSpec((1, c_out, tile_hw), lambda b, j: (b, 0, j))

    kernel = _make_root_kernel(n_children, skip)

    out = pl.pallas_call(
        kernel,
        out_shape=jax.ShapeDtypeStruct((n, c_out, hw), out_dtype),
        grid_spec=pltpu.PrefetchScalarGridSpec(
            num_scalar_prefetch=0,
            grid=grid,
            in_specs=x_specs + w_specs + [sb_spec, sb_spec],
            out_specs=out_spec,
        ),
        compiler_params=pltpu.CompilerParams(
            dimension_semantics=("parallel", "parallel"),
            vmem_limit_bytes=32 * 1024 * 1024,
        ),
    )(*xs, *w_parts, scale, bias)

    return out.reshape(n, c_out, h, w)


def _reference(children, weight, gamma, beta, running_mean, running_var, *, skip):
    x = jnp.concatenate(children, axis=1)
    c_out = weight.shape[0]
    w_mat = weight.reshape(c_out, -1)
    y = jnp.einsum("oc,nchw->nohw", w_mat, x,
                   precision=jax.lax.Precision.HIGHEST)
    inv_std = 1.0 / jnp.sqrt(running_var + BN_EPS)
    y = ((y - running_mean[None, :, None, None]) * (gamma * inv_std)[None, :, None, None]
         + beta[None, :, None, None])
    if skip:
        y = y + children[0]
    return jnp.where(y >= 0.0, y, NEG_SLOPE * y)


if __name__ == "__main__":
    key = jax.random.PRNGKey(0)
    keys = jax.random.split(key, 7)

    # Root(in_channels=16, out_channels=8, kernel_size=1, skip=True)
    N, H, W = 2, 16, 16
    C_OUT = 8
    C1, C2 = 8, 8            # children[0] must have C_OUT channels for the skip add
    C_IN = C1 + C2

    child0 = jax.random.normal(keys[0], (N, C1, H, W), dtype=jnp.float32)
    child1 = jax.random.normal(keys[1], (N, C2, H, W), dtype=jnp.float32)

    weight = 0.1 * jax.random.normal(keys[2], (C_OUT, C_IN, 1, 1), dtype=jnp.float32)
    gamma = 1.0 + 0.1 * jax.random.normal(keys[3], (C_OUT,), dtype=jnp.float32)
    beta = 0.1 * jax.random.normal(keys[4], (C_OUT,), dtype=jnp.float32)
    running_mean = 0.05 * jax.random.normal(keys[5], (C_OUT,), dtype=jnp.float32)
    running_var = 1.0 + 0.1 * jax.nn.softplus(
        jax.random.normal(keys[6], (C_OUT,), dtype=jnp.float32))

    # skip=True and skip=False paths
    for sk in (True, False):
        out = root_forward([child0, child1], weight, gamma, beta,
                           running_mean, running_var, skip=sk)
        out = jax.block_until_ready(out)
        ref = _reference([child0, child1], weight, gamma, beta,
                         running_mean, running_var, skip=sk)
        assert out.shape == (N, C_OUT, H, W)
        assert jnp.allclose(out, ref, atol=1e-5, rtol=1e-5), f"mismatch (skip={sk})"

    # Non-divisible spatial size exercises the cdiv grid + masked tail block.
    H2, W2 = 13, 13
    c0 = jax.random.normal(keys[0], (N, C1, H2, W2), dtype=jnp.float32)
    c1 = jax.random.normal(keys[1], (N, C2, H2, W2), dtype=jnp.float32)
    out = root_forward([c0, c1], weight, gamma, beta,
                       running_mean, running_var, skip=True)
    out = jax.block_until_ready(out)
    ref = _reference([c0, c1], weight, gamma, beta,
                     running_mean, running_var, skip=True)
    assert out.shape == (N, C_OUT, H2, W2)
    assert jnp.allclose(out, ref, atol=1e-5, rtol=1e-5), "mismatch (odd spatial)"

    print("KERNEL_OK")
</pallas_src>

<mosaic_0001>
module attributes {stable_mosaic.version = 11 : i64} {
  func.func @kernel(%arg0: i32, %arg1: i32, %arg2: memref<1x8x256xf32, #tpu.memory_space<vmem>>, %arg3: memref<1x8x256xf32, #tpu.memory_space<vmem>>, %arg4: memref<8x8xf32, #tpu.memory_space<vmem>>, %arg5: memref<8x8xf32, #tpu.memory_space<vmem>>, %arg6: memref<8x1xf32, #tpu.memory_space<vmem>>, %arg7: memref<8x1xf32, #tpu.memory_space<vmem>>, %arg8: memref<1x8x256xf32, #tpu.memory_space<vmem>>) attributes {dimension_semantics = [#tpu.dimension_semantics<parallel>, #tpu.dimension_semantics<parallel>], iteration_bounds = array<i64: 2, 1>, scalar_prefetch = 0 : i64, scratch_operands = 0 : i64, tpu.core_type = #tpu.core_type<tc>, window_params = [{transform_indices = @transform_0, window_bounds = array<i64: 1, 8, 256>}, {transform_indices = @transform_1, window_bounds = array<i64: 1, 8, 256>}, {pipeline_mode = #tpu.pipeline_mode<synchronous>, transform_indices = @transform_2, window_bounds = array<i64: 8, 8>}, {pipeline_mode = #tpu.pipeline_mode<synchronous>, transform_indices = @transform_3, window_bounds = array<i64: 8, 8>}, {pipeline_mode = #tpu.pipeline_mode<synchronous>, transform_indices = @transform_4, window_bounds = array<i64: 8, 1>}, {pipeline_mode = #tpu.pipeline_mode<synchronous>, transform_indices = @transform_5, window_bounds = array<i64: 8, 1>}, {transform_indices = @transform_6, window_bounds = array<i64: 1, 8, 256>}]} {
    %c0 = arith.constant 0 : index
    %c0_0 = arith.constant 0 : index
    %0 = vector.load %arg4[%c0, %c0_0] : memref<8x8xf32, #tpu.memory_space<vmem>>, vector<8x8xf32>
    %c0_1 = arith.constant 0 : index
    %c0_2 = arith.constant 0 : index
    %c0_3 = arith.constant 0 : index
    %1 = vector.load %arg2[%c0_1, %c0_2, %c0_3] : memref<1x8x256xf32, #tpu.memory_space<vmem>>, vector<1x8x256xf32>
    %2 = vector.shape_cast %1 : vector<1x8x256xf32> to vector<8x256xf32>
    %cst = arith.constant dense<0.000000e+00> : vector<8x256xf32>
    %3 = tpu.matmul %0, %2, %cst {dimension_numbers = #tpu.dot_dimension_numbers<[1], [0], [0], [1], [0, 0, 1, 1], [], []>} : vector<8x8xf32>, vector<8x256xf32>, vector<8x256xf32> -> vector<8x256xf32>
    %c0_4 = arith.constant 0 : index
    %c0_5 = arith.constant 0 : index
    %4 = vector.load %arg5[%c0_4, %c0_5] : memref<8x8xf32, #tpu.memory_space<vmem>>, vector<8x8xf32>
    %c0_6 = arith.constant 0 : index
    %c0_7 = arith.constant 0 : index
    %c0_8 = arith.constant 0 : index
    %5 = vector.load %arg3[%c0_6, %c0_7, %c0_8] : memref<1x8x256xf32, #tpu.memory_space<vmem>>, vector<1x8x256xf32>
    %6 = vector.shape_cast %5 : vector<1x8x256xf32> to vector<8x256xf32>
    %cst_9 = arith.constant dense<0.000000e+00> : vector<8x256xf32>
    %7 = tpu.matmul %4, %6, %cst_9 {dimension_numbers = #tpu.dot_dimension_numbers<[1], [0], [0], [1], [0, 0, 1, 1], [], []>} : vector<8x8xf32>, vector<8x256xf32>, vector<8x256xf32> -> vector<8x256xf32>
    %8 = arith.addf %3, %7 : vector<8x256xf32>
    %c0_10 = arith.constant 0 : index
    %c0_11 = arith.constant 0 : index
    %9 = vector.load %arg6[%c0_10, %c0_11] : memref<8x1xf32, #tpu.memory_space<vmem>>, vector<8x1xf32>
    %10 = vector.broadcast %9 : vector<8x1xf32> to vector<8x256xf32>
    %11 = arith.mulf %8, %10 : vector<8x256xf32>
    %c0_12 = arith.constant 0 : index
    %c0_13 = arith.constant 0 : index
    %12 = vector.load %arg7[%c0_12, %c0_13] : memref<8x1xf32, #tpu.memory_space<vmem>>, vector<8x1xf32>
    %13 = vector.broadcast %12 : vector<8x1xf32> to vector<8x256xf32>
    %14 = arith.addf %11, %13 : vector<8x256xf32>
    %c0_14 = arith.constant 0 : index
    %c0_15 = arith.constant 0 : index
    %c0_16 = arith.constant 0 : index
    %15 = vector.load %arg2[%c0_14, %c0_15, %c0_16] : memref<1x8x256xf32, #tpu.memory_space<vmem>>, vector<1x8x256xf32>
    %16 = vector.shape_cast %15 : vector<1x8x256xf32> to vector<8x256xf32>
    %17 = arith.addf %14, %16 : vector<8x256xf32>
    %cst_17 = arith.constant 0.00999999977 : f32
    %18 = vector.broadcast %cst_17 : f32 to vector<8x256xf32>
    %19 = arith.mulf %18, %17 : vector<8x256xf32>
    %20 = arith.maximumf %17, %19 : vector<8x256xf32>
    %c0_18 = arith.constant 0 : index
    %c0_19 = arith.constant 0 : index
    %c0_20 = arith.constant 0 : index
    %21 = vector.load %arg8[%c0_18, %c0_19, %c0_20] : memref<1x8x256xf32, #tpu.memory_space<vmem>>, vector<1x8x256xf32>
    %22 = vector.shape_cast %21 : vector<1x8x256xf32> to vector<8x256xf32>
    %23 = vector.shape_cast %20 : vector<8x256xf32> to vector<1x8x256xf32>
    tpu.vector_store %arg8[%c0_18, %c0_19, %c0_20], %23 {strides = array<i32>} : memref<1x8x256xf32, #tpu.memory_space<vmem>>, vector<1x8x256xf32>,
    return
  }
  func.func @transform_0(%arg0: i32, %arg1: i32) -> (i32, i32, i32) {
    %c0_i32 = arith.constant 0 : i32
    %c0_i32_0 = arith.constant 0 : i32
    return %arg0, %c0_i32, %arg1 : i32, i32, i32
  }
  func.func @transform_1(%arg0: i32, %arg1: i32) -> (i32, i32, i32) {
    %c0_i32 = arith.constant 0 : i32
    %c0_i32_0 = arith.constant 0 : i32
    return %arg0, %c0_i32, %arg1 : i32, i32, i32
  }
  func.func @transform_2(%arg0: i32, %arg1: i32) -> (i32, i32) {
    %c0_i32 = arith.constant 0 : i32
    %c0_i32_0 = arith.constant 0 : i32
    %c0_i32_1 = arith.constant 0 : i32
    return %c0_i32, %c0_i32_0 : i32, i32
  }
  func.func @transform_3(%arg0: i32, %arg1: i32) -> (i32, i32) {
    %c0_i32 = arith.constant 0 : i32
    %c0_i32_0 = arith.constant 0 : i32
    %c0_i32_1 = arith.constant 0 : i32
    return %c0_i32, %c0_i32_0 : i32, i32
  }
  func.func @transform_4(%arg0: i32, %arg1: i32) -> (i32, i32) {
    %c0_i32 = arith.constant 0 : i32
    %c0_i32_0 = arith.constant 0 : i32
    %c0_i32_1 = arith.constant 0 : i32
    return %c0_i32, %c0_i32_0 : i32, i32
  }
  func.func @transform_5(%arg0: i32, %arg1: i32) -> (i32, i32) {
    %c0_i32 = arith.constant 0 : i32
    %c0_i32_0 = arith.constant 0 : i32
    %c0_i32_1 = arith.constant 0 : i32
    return %c0_i32, %c0_i32_0 : i32, i32
  }
  func.func @transform_6(%arg0: i32, %arg1: i32) -> (i32, i32, i32) {
    %c0_i32 = arith.constant 0 : i32
    %c0_i32_0 = arith.constant 0 : i32
    return %arg0, %c0_i32, %arg1 : i32, i32, i32
  }
}

</mosaic_0001>

<bundles_post_ra>
// kernel: tpu_custom_call.1
= control target key start
LH: loop header
LB: loop body
LE: loop exit
PB: predicated region body
PF: predicated region fallthrough
CT: control target
= control target key end

     0   :  { %s1158_s0 = inlined_call_operand.hbm [shape: f32[2,8,256], index: 0, kind: input, shape index: {}]   ;;  %s1159_s1 = inlined_call_operand.hbm [shape: f32[2,8,256], index: 1, kind: input, shape index: {}]   ;;  %s1160_s2 = inlined_call_operand.vmem [shape: f32[8,8], index: 2, kind: input, shape index: {}]   ;;  %s1161_s3 = inlined_call_operand.vmem [shape: f32[8,8], index: 3, kind: input, shape index: {}]   ;;  %s1162_s4 = inlined_call_operand.vmem [shape: f32[8,1], index: 4, kind: input, shape index: {}]   ;;  %s1163_s5 = inlined_call_operand.vmem [shape: f32[8,1], index: 5, kind: input, shape index: {}]   ;;  %s1164_s6 = inlined_call_operand.hbm [shape: f32[2,8,256], index: 6, kind: output, shape index: {}]  }
   0x1   :  { %1168 = sst [smem:[#allocation11_spill]] %s1158_s0 }
   0x2   :  { %11 = vsyncpa [#allocation3], 0 }
   0x3   :  { %13 = vsyncpa [#allocation3 + $0x1], 0 }
   0x4   :  { %14 = vsyncpa [#allocation6], 0 }
   0x5   :  { %16 = vsyncpa [#allocation6 + $0x1], 0 }
   0x6   :  { %17 = vsyncpa [#allocation4], 0 }
   0x7   :  { %19 = vsyncpa [#allocation4 + $0x1], 0  ;;  %s921_s21 = smov 0   ;;  %s923_s22 = smov 0  }
   0x8   :  { %s925_s23 = smov 0   ;;  %s927_s24 = smov 0  }
   0x9   :  { %s929_s25 = smov 0   ;;  %s931_s26 = smov 0  }
   0xa LB: > { %s637_s27 = sadd.s32 4294967295, %s879_s26   ;;  %s638_s28 = sadd.s32 4294967294, %s879_s26   ;;  %s879_s26 = sphi %s931_s26, %s25_s26   ;;  %s875_s25 = sphi %s929_s25, %s1188_s25   ;;  %s871_s24 = sphi %s927_s24, %s1187_s24   ;;  %s867_s23 = sphi %s925_s23, %s1186_s23   ;;  %s863_s22 = sphi %s923_s22, %s1185_s22   ;;  %s859_s21 = sphi %s921_s21, %s1184_s21  }
   0xb   : > { %s37_s29 = sadd.s32 1, %s875_s25  ;;  %s46_s30 = sadd.s32 1, %s867_s23 }
   0xc   : > { %p39_p0 = scmp.ge.s32.totalorder %s37_s29, 2  ;;  %p53_p1 = scmp.ne.s32.totalorder %s867_s23, %s863_s22 }
   0xd   : > { %p54_p2 = scmp.eq.s32.totalorder %s879_s26, 0  ;;  %p59_p3 = scmp.ne.s32.totalorder %s863_s22, %s859_s21 }
   0xe   : > { %s1190_s29 = smov (%p39_p0, %s37_s29), 0  ;;  %p60_p5 = scmp.eq.s32.totalorder %s637_s27, 0 }
   0xf   : > { %p962_p4 = por %p54_p2, %p53_p1  ;;  %s41_s8 = ssub.s32 %s875_s25, %s1190_s29 }
  0x10   : > { %p197_p6 = scmp.eq.s32.totalorder %s637_s27, 1  ;;  %p44_p7 = scmp.eq.s32.totalorder %s41_s8, 0 }
  0x11   : > { %p968_p8 = por %p60_p5, %p59_p3  ;;  %p203_p10 = scmp.eq.s32.totalorder %s638_s28, 1 }
  0x12   : > { %p972_p9 = por %p197_p6, %p53_p1  ;;  %p680_p13 = scmp.lt.s32.totalorder %s879_s26, 2 }
  0x13   : > { %s1170_s9 = scalar_select %p968_p8, 1, 0 }
  0x14   : > { %s1171_s10 = scalar_select %p972_p9, 1, 0 }
  0x15   : > { %s977_s11 = scalar_select %p44_p7, %s867_s23, %s46_s30  }
  0x16   : > { %p979_p11 = por %p203_p10, %p59_p3  ;;  %s986_s13 = sand.u32 1, %s867_s23  }
  0x17   : > { %s1165_s14 = sshll.u32 %s986_s13, 4  ;;  %s658_s15 = sshll.u32 %s875_s25, 8 }
  0x18   : > { %s1172_s12 = scalar_select %p979_p11, 1, 0 }
  0x19   : > { %s1173_s0 = sld [smem:[#allocation11_spill]]  ;;  %s239_s19 = scalar_lea.vmem [#allocation2], %s1165_s14 }
  0x1a   : > { %s249_s20 = sshll.u32 %s239_s19, 4  ;;  %p1003_p0 = pnand %p680_p13, %p962_p4  ;;  %s999_s20 = int_to_ptr.vmem [resolvable:$true] %s249_s20 }
  0x1b   : > { %s236_s28 = scalar_lea.sflag [#allocation3], %s986_s13 }
  0x1c   : > { %p735_p5 = pneg %p1003_p0 }
  0x1f   : > { %s995_s18 = scalar_lea.hbm %s1173_s0, %s658_s15  ;;  %s738_s7 = scalar_lea.hbm %s1173_s0, 512 }
  0x20   : > { %s733_s30 = scalar_lea.hbm %s995_s18, 256  ;;  %p739_p4 = scmp.lt.u32.totalorder %s995_s18, %s1173_s0 }
  0x21   : > { %p734_p3 = scmp.ne.s32.totalorder %s995_s18, %s733_s30  ;;  %p740_p10 = scmp.lt.u32.totalorder %s738_s7, %s733_s30 }
  0x22   : > { %p742_p12 = scmp.lt.u32.totalorder %s733_s30, %s995_s18 }
  0x23   : > { %p736_p6 = pnand %p735_p5, %p734_p3  ;;  %p741_p13 = por %p740_p10, %p739_p4 }
  0x25   : > { %p737_p7 = pneg %p736_p6  ;;  %p743_p1 = por %p742_p12, %p741_p13 }
  0x27   : > { %p744_p2 = pnand %p743_p1, %p737_p7 }
  0x29   : > { %747 = shalt.err (!%p744_p2)
}
  0x2a   : > { %s748_s14 = scalar_lea.vmem %s999_s20, 256  ;;  %s881_s8 = smov [#allocation2]  }
  0x2b   : > { %p749_p3 = scmp.ne.s32.totalorder %s999_s20, %s748_s14  ;;  %s753_s16 = sshll.u32 %s881_s8, 4  ;;  %s754_s16 = int_to_ptr.vmem [resolvable:$false] %s753_s16 }
  0x2c   : > { %s755_s17 = scalar_lea.vmem %s754_s16, 512  ;;  %p756_p9 = scmp.lt.s32.totalorder %s999_s20, %s754_s16 }
  0x2d   : > { %p751_p6 = pnand %p749_p3, %p735_p5  ;;  %p757_p4 = scmp.lt.s32.totalorder %s755_s17, %s748_s14 }
  0x2f   : > { %p752_p11 = pneg %p751_p6  ;;  %p758_p10 = por %p757_p4, %p756_p9 }
  0x31   : > { %p759_p12 = pnand %p758_p10, %p752_p11 }
  0x33   : > { %762 = shalt.err (!%p759_p12)
}
  0x34   : > { %672 = dma.hbm_to_vmem [thread:$0]  (!%p1003_p0), %s995_s18, 256, %s999_s20, %s236_s28  }
  0x35   : > { %p1175_p1 = scmp.lt.s32.totalorder %s879_s26, 3  ;;  %p1176_p2 = scmp.ge.s32.totalorder %s879_s26, 1 }
  0x36   : > { %s1048_s19 = scalar_lea.hbm %s1159_s1, %s658_s15  ;;  %s1178_s8 = sshll.u32 %s986_s13, 4 }
  0x37   : > { %p1039_p7 = pnand %p1176_p2, %p1175_p1  ;;  %s260_s16 = scalar_lea.vmem [#allocation5], %s1178_s8 }
  0x38   : > { %s270_s17 = sshll.u32 %s260_s16, 4  ;;  %s257_s18 = scalar_lea.sflag [#allocation6], %s986_s13  ;;  %s271_s17 = int_to_ptr.vmem [resolvable:$true] %s270_s17 }
  0x39   : > { %s1177_s30 = scalar_select %p1039_p7, 1, 0 }
  0x3a   : > { %s763_s20 = scalar_lea.hbm %s1048_s19, 256  ;;  %s768_s15 = scalar_lea.hbm %s1159_s1, 512 }
  0x3b   : > { %p764_p9 = scmp.ne.s32.totalorder %s1048_s19, %s763_s20  ;;  %p769_p3 = scmp.lt.u32.totalorder %s1048_s19, %s1159_s1 }
  0x3c   : > { %p770_p6 = scmp.lt.u32.totalorder %s768_s15, %s763_s20  ;;  %p772_p10 = scmp.lt.u32.totalorder %s763_s20, %s1048_s19 }
  0x3d   : > { %p766_p11 = pnand %p764_p9, %p735_p5 }
  0x3e   : > { %p771_p4 = por %p770_p6, %p769_p3 }
  0x3f   : > { %p767_p13 = pneg %p766_p11 }
  0x40   : > { %p773_p12 = por %p772_p10, %p771_p4 }
  0x42   : > { %p774_p1 = pnand %p773_p12, %p767_p13 }
  0x44   : > { %777 = shalt.err (!%p774_p1)
}
  0x45   : > { %s778_s13 = scalar_lea.vmem %s271_s17, 256  ;;  %s882_s8 = smov [#allocation5]  }
  0x46   : > { %p779_p2 = scmp.ne.s32.totalorder %s271_s17, %s778_s13  ;;  %s783_s0 = sshll.u32 %s882_s8, 4  ;;  %s784_s0 = int_to_ptr.vmem [resolvable:$false] %s783_s0 }
  0x47   : > { %s785_s16 = scalar_lea.vmem %s784_s0, 512  ;;  %p786_p8 = scmp.lt.s32.totalorder %s271_s17, %s784_s0 }
  0x48   : > { %p781_p9 = pnand %p779_p2, %p735_p5  ;;  %p787_p7 = scmp.lt.s32.totalorder %s785_s16, %s778_s13 }
  0x4a   : > { %p782_p11 = pneg %p781_p9  ;;  %p788_p3 = por %p787_p7, %p786_p8 }
  0x4c   : > { %p789_p6 = pnand %p788_p3, %p782_p11 }
  0x4e   : > { %792 = shalt.err (!%p789_p6)
}
  0x4f   : > { %675 = dma.hbm_to_vmem [thread:$0]  (!%p1003_p0), %s1048_s19, 256, %s271_s17, %s257_s18  }
  0x50   : > { %p1179_p13 = scmp.ne.s32.totalorder %s1177_s30, 0 }
  0x51   : > { %s1075_s20 = sand.u32 (!%p1179_p13), 1, %s863_s22   ;;  %p1180_p8 = scmp.ne.s32.totalorder (!%p1179_p13), %s1170_s9, 0 }
  0x52   : > { %279 = sbr.rel (%p1179_p13) target bundleno = 336 (0x150), region = 44  ;;  %s1078_s28 = sshll.u32 (!%p1179_p13), %s1075_s20, 4 }
  0x53   : > { %s282_s15 = scalar_lea.sflag (!%p1179_p13), [#allocation3], %s1075_s20  ;;  %s285_s14 = scalar_lea.vmem (!%p1179_p13), [#allocation2], %s1078_s28 }
  0x59   : > { %846 = dma.done.wait (%p1180_p8), %s282_s15, 256  }
  0x5a   : > { %848 = vsyncadd (%p1180_p8), %s282_s15, 4294967040  ;;  %s291_s27 = scalar_lea.sflag [#allocation6], %s1075_s20  ;;  %s294_s30 = scalar_lea.vmem [#allocation5], %s1078_s28 }
  0x5b   : > { %850 = dma.done.wait (%p1180_p8), %s291_s27, 256  }
  0x5c   : > { %852 = vsyncadd (%p1180_p8), %s291_s27, 4294967040  ;;  %v883_v0 = vmov 0.0   ;;  %v884_v1 = vmov 0   ;;  %v336_v2 = vld [vmem:[%s294_s30 + $0x8] sm:$0xff]  ;;  %v335_v4 = vld [vmem:[%s294_s30] sm:$0xff]  ;;  %vm337_vm0 = vcmask 64512  }
  0x5d   : > { %405 = vmatprep.mubr.f32.mxu1 %v883_v0  ;;  %479 = vmatprep.mubr.f32.mxu0 %v883_v0  ;;  %v333_v3 = vld [vmem:[%s285_s14 + $0x8] sm:$0xff]  ;;  %v332_v5 = vld [vmem:[%s285_s14] sm:$0xff]  ;;  %s660_s16 = sshll.u32 %s871_s24, 8  ;;  %s327_s15 = scalar_lea.vmem [#allocation7], %s1078_s28 }
  0x5e   : > { %732 = vset.pattern.permute.xlu0 %v884_v1  ;;  %341 = vmatprep.subr.mxu1 %v336_v2  ;;  %v334_v6 = vld [vmem:[%s1161_s3] sm:$0xff]  ;;  %s527_s14 = sshll.u32 %s327_s15, 4  ;;  %s1109_s19 = scalar_lea.hbm %s1164_s6, %s660_s16  ;;  %s1111_s14 = int_to_ptr.vmem [resolvable:$true] %s527_s14 }
  0x5f   : > { %415 = vmatprep.subr.mxu0 %v333_v3  ;;  %v331_v7 = vld [vmem:[%s1160_s2] sm:$0xff]  ;;  %342 = vmatpush1.msra.mxu1 %v335_v4  ;;  %s511_s17 = scalar_lea.sflag [#allocation4], %s1075_s20  ;;  %s793_s18 = scalar_lea.vmem %s1111_s14, 256 }
  0x60   : > { %416 = vmatpush1.msra.mxu0 %v332_v5  ;;  %v486_v8 = vld [vmem:[%s1162_s4] sm:$0xff]  ;;  %651 = vmatmul.mubr.msk.f32.vlgmr.msra.gmra.mrb[0].mxu1 %vm337_vm0, %v334_v6  ;;  %p794_p0 = scmp.ne.s32.totalorder %s1111_s14, %s793_s18  ;;  %p1181_p5 = scmp.ne.s32.totalorder %s1171_s10, 0 }
  0x61   : > { %652 = vmatmul.mubr.msk.f32.vlgmr.msra.gmra.mrb[0].mxu0 %vm337_vm0, %v331_v7  ;;  %489 = vperm.xlu0 %732, %v486_v8   ;;  %v494_v9 = vld [vmem:[%s1163_s5] sm:$0xff]  ;;  %s885_s24 = smov [#allocation7]  }
  0x62   : > { %p795_p7 = pnand %p794_p0, %p1181_p5  ;;  %s797_s28 = sshll.u32 %s885_s24, 4  ;;  %s798_s28 = int_to_ptr.vmem [resolvable:$false] %s797_s28 }
  0x63   : > { %s799_s7 = scalar_lea.vmem %s798_s28, 512  ;;  %p800_p10 = scmp.lt.s32.totalorder %s1111_s14, %s798_s28 }
  0x64   : > { %p796_p4 = pneg %p795_p7  ;;  %p801_p12 = scmp.lt.s32.totalorder %s799_s7, %s793_s18 }
  0x65   : > { %497 = vperm.xlu0 %732, %v494_v9  }
  0x66   : > { %p802_p1 = por %p801_p12, %p800_p10 }
  0x68   : > { %p803_p2 = pnand %p802_p1, %p796_p4 }
  0xe0   : > { %v490_v10 = vpop.permute.xlu0 %489 }
  0xe4   : > { %v498_v18 = vpop.permute.xlu0 %497 }
 0x133   : > { %v407_v11 = vpop.f32.mrb[0].mxu1 }
 0x134   : > { %v481_v12 = vpop.f32.mrb[0].mxu0  ;;  %v409_v14 = vpop.f32.mrb[1].mxu1 }
 0x135   : > { %v482_v13 = vadd.f32 %v481_v12, %v407_v11  ;;  %v483_v15 = vpop.f32.mrb[1].mxu0 }
 0x136   : > { %v484_v16 = vadd.f32 %v483_v15, %v409_v14 }
 0x137   : > { %v492_v17 = vmul.f32 %v490_v10, %v482_v13 }
 0x138   : > { %v493_v19 = vmul.f32 %v490_v10, %v484_v16 }
 0x139   : > { %v500_v20 = vadd.f32 %v498_v18, %v492_v17 }
 0x13a   : > { %v501_v21 = vadd.f32 %v498_v18, %v493_v19 }
 0x13b   : > { %v502_v22 = vadd.f32 %v500_v20, %v332_v5 }
 0x13c   : > { %v503_v23 = vadd.f32 %v501_v21, %v333_v3 }
 0x13d   : > { %v504_v24 = vmul.f32 0.01, %v502_v22 }
 0x13e   : > { %v505_v25 = vmul.f32 0.01, %v503_v23 }
 0x13f   : > { %v506_v26 = vmax.f32 %v502_v22, %v504_v24 }
 0x140   : > { %v507_v27 = vmax.f32 %v503_v23, %v505_v25 }
 0x141   : > { %508 = vst [vmem:[%s327_s15] sm:$0xff] %v506_v26 }
 0x142   : > { %509 = vst [vmem:[%s327_s15 + $0x8] sm:$0xff] %v507_v27 }
 0x143   : > { %806 = shalt.err (!%p803_p2)
}
 0x144   : > { %s807_s20 = scalar_lea.hbm %s1109_s19, 256  ;;  %s811_s8 = scalar_lea.hbm %s1164_s6, 512 }
 0x145   : > { %p808_p9 = scmp.ne.s32.totalorder %s1109_s19, %s807_s20  ;;  %p812_p6 = scmp.lt.u32.totalorder %s1109_s19, %s1164_s6 }
 0x146   : > { %p813_p13 = scmp.lt.u32.totalorder %s811_s8, %s807_s20  ;;  %p815_p0 = scmp.lt.u32.totalorder %s807_s20, %s1109_s19 }
 0x147   : > { %p809_p11 = pnand %p808_p9, %p1181_p5 }
 0x148   : > { %p814_p8 = por %p813_p13, %p812_p6 }
 0x149   : > { %p810_p3 = pneg %p809_p11 }
 0x14a   : > { %p816_p7 = por %p815_p0, %p814_p8 }
 0x14c   : > { %p817_p4 = pnand %p816_p7, %p810_p3 }
 0x14e   : > { %820 = shalt.err (!%p817_p4)
}
 0x14f   : > { %667 = dma.vmem_to_hbm [thread:$0]  (%p1181_p5), %s1111_s14, 256, %s1109_s19, %s511_s17  }
 0x150 PF: > { %s539_s15 = sand.u32 1, %s859_s21   ;;  %p1182_p10 = scmp.ne.s32.totalorder %s1172_s12, 0 }
 0x151   : > { %p1183_p12 = scmp.ge.s32.totalorder %s879_s26, 2  ;;  %s540_s27 = scalar_lea.sflag [#allocation4], %s539_s15 }
 0x153   : > { %p677_p1 = pnand %p1183_p12, %p1182_p10 }
 0x155   : > { %854 = dma.done.wait (!%p677_p1), %s540_s27, 256  }
 0x156   : > { %856 = vsyncadd (!%p677_p1), %s540_s27, 4294967040  ;;  %s25_s26 = sadd.s32 1, %s879_s26   ;;  %s1184_s21 = smov %s863_s22 }
 0x157   : > { %p22_p2 = scmp.ge.s32.totalorder %s25_s26, 4   ;;  %s1185_s22 = smov %s867_s23 }
 0x158   : > { %s1186_s23 = smov %s977_s11  ;;  %s1187_s24 = smov %s875_s25 }
 0x159   : > { %s1188_s25 = smov %s1190_s29  ;;  %24 = sbr.rel (!%p22_p2) target bundleno = 10 (0xa), region = 102 }
 0x160   :  { %545 = vsyncpa [#allocation3], 1 }
 0x161   :  { %547 = vsyncpa [#allocation3 + $0x1], 1 }
 0x162   :  { %548 = vsyncpa [#allocation6], 1 }
 0x163   :  { %550 = vsyncpa [#allocation6 + $0x1], 1 }
 0x164   :  { %551 = vsyncpa [#allocation4], 1 }
 0x165   :  { %553 = vsyncpa [#allocation4 + $0x1], 1 }

</bundles_post_ra>
